<compile_context>
chip_gen: v7x
topology: tpu7x:2x2x1
jax: 0.10.0
libtpu: 0.0.40
codegen_flags: <defaults>
</compile_context>

<pallas_src>
import functools

import jax
import jax.numpy as jnp
import numpy as np
from jax.experimental import pallas as pl
from jax.experimental.pallas import tpu as pltpu


def _round_up(x, m):
    return (x + m - 1) // m * m


# ----------------------------- Pallas kernel -------------------------------
def _lm_autoencoder_kernel(x_ref, we_ref, be_ref, wd_ref, bd_ref, out_ref):
    # Fused per-tile: y = LeakyReLU(x @ W_enc + b_enc, 0.2) @ W_dec + b_dec
    # MXU operands bf16 (x cast in-kernel), accumulation f32; bias add and
    # LeakyReLU stay in f32 (v5e has no bf16 VPU path -- keep this epilogue).
    x = x_ref[...].astype(jnp.bfloat16)                       # (BM, D)
    h = jnp.dot(x, we_ref[...], preferred_element_type=jnp.float32)
    h = h + be_ref[...]                                        # (1, Hp) broadcast
    h = jnp.where(h > 0, h, 0.2 * h)                           # LeakyReLU(0.2), f32
    y = jnp.dot(h.astype(jnp.bfloat16), wd_ref[...],
                preferred_element_type=jnp.float32)
    y = y + bd_ref[...]                                        # (1, D) broadcast
    out_ref[...] = y.astype(out_ref.dtype)


# ----------------------------- wrapper --------------------------------------
@functools.partial(jax.jit, static_argnames=("block_m", "out_dtype"))
def lm_autoencoder(x_lm, w_enc_p, b_enc_p, w_dec_p, b_dec_p, *,
                   block_m=512, out_dtype=None):
    """Batched landmark auto-encoder.

    x_lm:    (B, D) float32 -- passed straight through, no padded copy.
    w_enc_p: (D, Hp) bf16,  b_enc_p: (1, Hp) f32   (Hp = round_up(H, 128))
    w_dec_p: (Hp, D) bf16,  b_dec_p: (1, D)  f32   (prepared once at init)

    out_dtype: None -> x dtype (f32).  NOTE: the f32 output write is the
    dominant HBM stream; use jnp.bfloat16 if the consumer tolerates it.
    """
    B, D = x_lm.shape
    Dw, Hp = w_enc_p.shape
    assert Dw == D and w_dec_p.shape == (Hp, D) and Hp % 128 == 0
    out_dtype = x_lm.dtype if out_dtype is None else np.dtype(out_dtype)

    # Row tiling: balance tiles so the last block isn't mostly padding, and
    # ensure >= 2 grid steps when possible so dimension_semantics=("parallel",)
    # feeds both of v7x's TensorCores (no effect on 1-TC v5e/v6e).
    nb = pl.cdiv(B, block_m)
    if nb < 2 and B > 8:
        nb = 2
    BM = min(_round_up(pl.cdiv(B, nb), 8), _round_up(B, 8))
    grid = (pl.cdiv(B, BM),)

    flops = 4 * B * D * Hp                               # two GEMMs, 2*B*D*Hp each
    bytes_accessed = (B * D * x_lm.dtype.itemsize
                      + w_enc_p.size * 2 + w_dec_p.size * 2
                      + b_enc_p.size * 4 + b_dec_p.size * 4
                      + B * D * np.dtype(out_dtype).itemsize)

    return pl.pallas_call(
        _lm_autoencoder_kernel,
        out_shape=jax.ShapeDtypeStruct((B, D), out_dtype),
        grid_spec=pltpu.PrefetchScalarGridSpec(
            num_scalar_prefetch=0,
            grid=grid,
            in_specs=[
                # x: tiled over rows, full (unpadded) feature width.  Partial
                # last row-block is handled by Pallas boundary masking.
                pl.BlockSpec((BM, D), lambda i: (i, 0)),
                # Weights/biases: constant index_map -> DMA'd once, then
                # VMEM-resident across all grid steps.
                # TODO(synk): pipeline_mode=pl.Buffered(1) would drop their
                # second buffer (~1.8 MiB VMEM); left at default for safety.
                pl.BlockSpec((D, Hp), lambda i: (0, 0)),   # W_enc
                pl.BlockSpec((1, Hp), lambda i: (0, 0)),   # b_enc
                pl.BlockSpec((Hp, D), lambda i: (0, 0)),   # W_dec
                pl.BlockSpec((1, D), lambda i: (0, 0)),    # b_dec
            ],
            # Full-width output block: kernel writes the (B, D) result
            # directly -- no padded intermediate, no slice-back copy.
            out_specs=pl.BlockSpec((BM, D), lambda i: (i, 0)),
        ),
        compiler_params=pltpu.CompilerParams(
            dimension_semantics=("parallel",),      # shards grid over v7x's 2 TCs
            vmem_limit_bytes=48 * 1024 * 1024,      # headroom for block_m up to ~1024
        ),
        cost_estimate=pl.CostEstimate(
            flops=flops, transcendentals=0, bytes_accessed=bytes_accessed),
    )(x_lm, w_enc_p, b_enc_p, w_dec_p, b_dec_p)


# ------------------------ param prep (hoisted out of hot path) --------------
def prepare_lm_params(w_enc, b_enc, w_dec, b_dec):
    """Pad the hidden dim to a multiple of 128 (lane-dense) and cast weights
    to bf16, once, at init time.  Padded rows/cols/lanes are zero so they
    contribute nothing to the result."""
    D, H = w_enc.shape
    Hp = _round_up(H, 128)
    w_enc_p = jnp.zeros((D, Hp), jnp.bfloat16).at[:, :H].set(
        jnp.asarray(w_enc, jnp.bfloat16))
    b_enc_p = jnp.zeros((1, Hp), jnp.float32).at[:, :H].set(
        jnp.asarray(b_enc, jnp.float32).reshape(1, H))
    w_dec_p = jnp.zeros((Hp, D), jnp.bfloat16).at[:H, :].set(
        jnp.asarray(w_dec, jnp.bfloat16))
    b_dec_p = jnp.asarray(b_dec, jnp.float32).reshape(1, D)
    return w_enc_p, b_enc_p, w_dec_p, b_dec_p


# ----------------------------- Trainer wrapper ------------------------------
class TrainerPallas:
    """JAX/Pallas analogue of trainer_face_lm.Trainer (inference-side only)."""

    def __init__(self, d_lm=256, hidden=128, lr=1e-4, seed=0):
        key = jax.random.PRNGKey(seed)
        k1, k2 = jax.random.split(key)
        # weights_init('gaussian'): normal_(w, 0.0, 0.02); bias = 0
        self.w_enc = (0.02 * jax.random.normal(k1, (d_lm, hidden))).astype(jnp.float32)
        self.b_enc = jnp.zeros((1, hidden), jnp.float32)
        self.w_dec = (0.02 * jax.random.normal(k2, (hidden, d_lm))).astype(jnp.float32)
        self.b_dec = jnp.zeros((1, d_lm), jnp.float32)
        # Pre-padded / pre-cast kernel operands (per review: no per-call prep).
        (self.w_enc_p, self.b_enc_p,
         self.w_dec_p, self.b_dec_p) = prepare_lm_params(
            self.w_enc, self.b_enc, self.w_dec, self.b_dec)
        self.lr = lr

    def get_scheduler_lr(self, lr_decay_step=1000, lr_decay_weight=0.5, it=0):
        # mirror of get_scheduler(): pure scalar host math
        times = (it + 1) // lr_decay_step
        lr = self.lr
        for _ in range(times):
            lr = np.maximum(1e-05, lr * lr_decay_weight)
        return float(lr)

    def test(self, x_lm, decoder_id=0, block_m=512, out_dtype=None):
        # TODO(synk): decoder_id selects one of `decoder_num` decoders in the
        # original model; a single decoder is used here.
        return lm_autoencoder(x_lm, self.w_enc_p, self.b_enc_p,
                              self.w_dec_p, self.b_dec_p,
                              block_m=block_m, out_dtype=out_dtype)

    def forward(self, *inputs):
        # Exact semantics of Trainer.forward in the PyTorch source.
        print('Forward function not implemented.')
        return None


# --------------------------------- main -------------------------------------
if __name__ == "__main__":
    # Small stand-ins for the real 1767 / 256 dims.  D_LM deliberately NOT a
    # multiple of 128 (full-width blocks + masked tail lanes are exercised);
    # HID=96 exercises the hidden-dim padding to 128.
    B, D_LM, HID = 24, 250, 96
    trainer = TrainerPallas(d_lm=D_LM, hidden=HID, lr=1e-4, seed=0)

    key = jax.random.PRNGKey(0)
    x_lm = jax.random.normal(key, (B, D_LM), dtype=jnp.float32)

    # forward() semantics (prints the not-implemented message, returns None)
    _ = trainer.forward(x_lm)

    # hot path: batched landmark auto-encoder via the Pallas kernel.
    # block_m=16 -> BM=16, grid=(2,): exercises VMEM-resident weights across
    # grid steps AND a partial last row-block (24 = 16 + 8 valid rows).
    # Real workloads should use the default block_m=512 (768-1024 on v6e/v7x).
    y = trainer.test(x_lm, decoder_id=0, block_m=16)
    y = jax.block_until_ready(y)
    assert y.shape == (B, D_LM) and y.dtype == jnp.float32

    # bf16-matched reference (kernel does bf16 MXU math with f32 accumulate)
    xb = x_lm.astype(jnp.bfloat16)
    h_ref = jnp.dot(xb, trainer.w_enc.astype(jnp.bfloat16),
                    preferred_element_type=jnp.float32) + trainer.b_enc
    h_ref = jnp.where(h_ref > 0, h_ref, 0.2 * h_ref)
    y_ref = jnp.dot(h_ref.astype(jnp.bfloat16), trainer.w_dec.astype(jnp.bfloat16),
                    preferred_element_type=jnp.float32) + trainer.b_dec
    np.testing.assert_allclose(np.asarray(y), np.asarray(y_ref),
                               rtol=1e-3, atol=1e-3)

    _ = trainer.get_scheduler_lr()
    print("KERNEL_OK")
</pallas_src>

<mosaic_0001>
module attributes {stable_mosaic.version = 11 : i64} {
  func.func @_lm_autoencoder_kernel(%arg0: i32, %arg1: memref<16x250xf32, #tpu.memory_space<vmem>>, %arg2: memref<250x128xbf16, #tpu.memory_space<vmem>>, %arg3: memref<1x128xf32, #tpu.memory_space<vmem>>, %arg4: memref<128x250xbf16, #tpu.memory_space<vmem>>, %arg5: memref<1x250xf32, #tpu.memory_space<vmem>>, %arg6: memref<16x250xf32, #tpu.memory_space<vmem>>) attributes {dimension_semantics = [#tpu.dimension_semantics<parallel>], iteration_bounds = array<i64: 2>, scalar_prefetch = 0 : i64, scratch_operands = 0 : i64, tpu.core_type = #tpu.core_type<tc>, window_params = [{transform_indices = @transform_0, window_bounds = array<i64: 16, 250>}, {pipeline_mode = #tpu.pipeline_mode<synchronous>, transform_indices = @transform_1, window_bounds = array<i64: 250, 128>}, {pipeline_mode = #tpu.pipeline_mode<synchronous>, transform_indices = @transform_2, window_bounds = array<i64: 1, 128>}, {pipeline_mode = #tpu.pipeline_mode<synchronous>, transform_indices = @transform_3, window_bounds = array<i64: 128, 250>}, {pipeline_mode = #tpu.pipeline_mode<synchronous>, transform_indices = @transform_4, window_bounds = array<i64: 1, 250>}, {transform_indices = @transform_5, window_bounds = array<i64: 16, 250>}]} {
    %c0 = arith.constant 0 : index
    %c0_0 = arith.constant 0 : index
    %0 = vector.load %arg1[%c0, %c0_0] : memref<16x250xf32, #tpu.memory_space<vmem>>, vector<16x250xf32>
    %1 = arith.truncf %0 : vector<16x250xf32> to vector<16x250xbf16>
    %c0_1 = arith.constant 0 : index
    %c0_2 = arith.constant 0 : index
    %2 = vector.load %arg2[%c0_1, %c0_2] : memref<250x128xbf16, #tpu.memory_space<vmem>>, vector<250x128xbf16>
    %cst = arith.constant dense<0.000000e+00> : vector<16x128xf32>
    %3 = tpu.matmul %1, %2, %cst {dimension_numbers = #tpu.dot_dimension_numbers<[1], [0], [0], [1], [0, 0, 1, 1], [], []>} : vector<16x250xbf16>, vector<250x128xbf16>, vector<16x128xf32> -> vector<16x128xf32>
    %c0_3 = arith.constant 0 : index
    %c0_4 = arith.constant 0 : index
    %4 = vector.load %arg3[%c0_3, %c0_4] : memref<1x128xf32, #tpu.memory_space<vmem>>, vector<1x128xf32>
    %5 = vector.broadcast %4 : vector<1x128xf32> to vector<16x128xf32>
    %6 = arith.addf %3, %5 : vector<16x128xf32>
    %cst_5 = arith.constant 0.000000e+00 : f32
    %7 = vector.broadcast %cst_5 : f32 to vector<16x128xf32>
    %8 = arith.cmpf ogt, %6, %7 : vector<16x128xf32>
    %cst_6 = arith.constant 2.000000e-01 : f32
    %9 = vector.broadcast %cst_6 : f32 to vector<16x128xf32>
    %10 = arith.mulf %9, %6 : vector<16x128xf32>
    %11 = arith.select %8, %6, %10 : vector<16x128xi1>, vector<16x128xf32>
    %12 = arith.truncf %11 : vector<16x128xf32> to vector<16x128xbf16>
    %c0_7 = arith.constant 0 : index
    %c0_8 = arith.constant 0 : index
    %13 = vector.load %arg4[%c0_7, %c0_8] : memref<128x250xbf16, #tpu.memory_space<vmem>>, vector<128x250xbf16>
    %cst_9 = arith.constant dense<0.000000e+00> : vector<16x250xf32>
    %14 = tpu.matmul %12, %13, %cst_9 {dimension_numbers = #tpu.dot_dimension_numbers<[1], [0], [0], [1], [0, 0, 1, 1], [], []>} : vector<16x128xbf16>, vector<128x250xbf16>, vector<16x250xf32> -> vector<16x250xf32>
    %c0_10 = arith.constant 0 : index
    %c0_11 = arith.constant 0 : index
    %15 = vector.load %arg5[%c0_10, %c0_11] : memref<1x250xf32, #tpu.memory_space<vmem>>, vector<1x250xf32>
    %16 = vector.broadcast %15 : vector<1x250xf32> to vector<16x250xf32>
    %17 = arith.addf %14, %16 : vector<16x250xf32>
    %c0_12 = arith.constant 0 : index
    %c0_13 = arith.constant 0 : index
    %18 = vector.load %arg6[%c0_12, %c0_13] : memref<16x250xf32, #tpu.memory_space<vmem>>, vector<16x250xf32>
    tpu.vector_store %arg6[%c0_12, %c0_13], %17 {strides = array<i32>} : memref<16x250xf32, #tpu.memory_space<vmem>>, vector<16x250xf32>,
    return
  }
  func.func @transform_0(%arg0: i32) -> (i32, i32) {
    %c0_i32 = arith.constant 0 : i32
    %c0_i32_0 = arith.constant 0 : i32
    return %arg0, %c0_i32 : i32, i32
  }
  func.func @transform_1(%arg0: i32) -> (i32, i32) {
    %c0_i32 = arith.constant 0 : i32
    %c0_i32_0 = arith.constant 0 : i32
    %c0_i32_1 = arith.constant 0 : i32
    return %c0_i32, %c0_i32_0 : i32, i32
  }
  func.func @transform_2(%arg0: i32) -> (i32, i32) {
    %c0_i32 = arith.constant 0 : i32
    %c0_i32_0 = arith.constant 0 : i32
    %c0_i32_1 = arith.constant 0 : i32
    return %c0_i32, %c0_i32_0 : i32, i32
  }
  func.func @transform_3(%arg0: i32) -> (i32, i32) {
    %c0_i32 = arith.constant 0 : i32
    %c0_i32_0 = arith.constant 0 : i32
    %c0_i32_1 = arith.constant 0 : i32
    return %c0_i32, %c0_i32_0 : i32, i32
  }
  func.func @transform_4(%arg0: i32) -> (i32, i32) {
    %c0_i32 = arith.constant 0 : i32
    %c0_i32_0 = arith.constant 0 : i32
    %c0_i32_1 = arith.constant 0 : i32
    return %c0_i32, %c0_i32_0 : i32, i32
  }
  func.func @transform_5(%arg0: i32) -> (i32, i32) {
    %c0_i32 = arith.constant 0 : i32
    %c0_i32_0 = arith.constant 0 : i32
    return %arg0, %c0_i32 : i32, i32
  }
}

</mosaic_0001>

<bundles_post_ra>
// kernel: lm_autoencoder.1
= control target key start
LH: loop header
LB: loop body
LE: loop exit
PB: predicated region body
PF: predicated region fallthrough
CT: control target
= control target key end

     0   :  { %10 = vsyncpa [#allocation3], 0  ;;  %s1423_s0 = inlined_call_operand.hbm [shape: f32[24,250], index: 0, kind: input, shape index: {}]   ;;  %s1424_s1 = inlined_call_operand.hbm [shape: bf16[250,128], index: 1, kind: input, shape index: {}]   ;;  %s1425_s2 = inlined_call_operand.vmem [shape: f32[1,128], index: 2, kind: input, shape index: {}]   ;;  %s1426_s3 = inlined_call_operand.hbm [shape: bf16[128,250], index: 3, kind: input, shape index: {}]   ;;  %s1427_s4 = inlined_call_operand.vmem [shape: f32[1,250], index: 4, kind: input, shape index: {}]   ;;  %s1428_s5 = inlined_call_operand.hbm [shape: f32[24,250], index: 5, kind: output, shape index: {}]  }
   0x1   :  { %12 = vsyncpa [#allocation3 + $0x1], 0 }
   0x2   :  { %13 = vsyncpa [#allocation6], 0 }
   0x3   :  { %14 = vsyncpa [#allocation4], 0 }
   0x4   :  { %16 = vsyncpa [#allocation4 + $0x1], 0  ;;  %s1159_s18 = smov 0   ;;  %s1161_s19 = smov 0  }
   0x5   :  { %s1163_s20 = smov 0   ;;  %s1165_s21 = smov 0  }
   0x6 LB: > { %s1180_s22 = sadd.s32 4294967295, %s1114_s21   ;;  %s758_s23 = sadd.s32 4294967294, %s1114_s21   ;;  %s1114_s21 = sphi %s1165_s21, %s1450_s21   ;;  %s1110_s20 = sphi %s1163_s20, %s1449_s20   ;;  %s1106_s19 = sphi %s1161_s19, %s1448_s19   ;;  %s1102_s18 = sphi %s1159_s18, %s1447_s18  }
   0x7   : > { %s1184_s24 = sadd.s32 1, %s1114_s21   ;;  %s29_s25 = sadd.s32 1, %s1110_s20 }
   0x8   : > { %s26_s26 = ssub.s32 %s1114_s21, %s1184_s24  ;;  %p36_p0 = scmp.ne.s32.totalorder %s1110_s20, %s1106_s19 }
   0x9   : > { %p27_p1 = scmp.eq.s32.totalorder %s26_s26, 0  ;;  %p37_p2 = scmp.eq.s32.totalorder %s1114_s21, 0 }
   0xa   : > { %p42_p3 = scmp.ne.s32.totalorder %s1106_s19, %s1102_s18  ;;  %p1429_p4 = scmp.eq.s32.totalorder %s1180_s22, 0 }
   0xb   : > { %s1196_s27 = scalar_select %p27_p1, %s1110_s20, %s29_s25  }
   0xc   : > { %p1198_p5 = por %p37_p2, %p36_p0  ;;  %p1204_p6 = por %p1429_p4, %p42_p3 }
   0xd   : > { %1432 = sst [smem:[#allocation12_spill]] %s1196_s27  ;;  %p150_p7 = scmp.eq.s32.totalorder %s1180_s22, 1 }
   0xe   : > { %s1433_s28 = scalar_select %p1198_p5, 1, 0 }
   0xf   : > { %s1434_s29 = scalar_select %p1204_p6, 1, 0 }
  0x10   : > { %p156_p8 = scmp.eq.s32.totalorder %s758_s23, 1  ;;  %p759_p9 = scmp.ge.s32.totalorder %s1114_s21, 1 }
  0x11   : > { %p163_p10 = scmp.lt.s32.totalorder %s1114_s21, 3  ;;  %p1211_p11 = por %p150_p7, %p36_p0 }
  0x12   : > { %p1215_p12 = por %p156_p8, %p42_p3  ;;  %s1116_s8 = smov [#allocation5]  }
  0x13   : > { %s1435_s30 = scalar_select %p1211_p11, 1, 0 }
  0x14   : > { %s1436_s6 = scalar_select %p1215_p12, 1, 0 }
  0x15   : > { %p1219_p13 = pnand %p759_p9, %p163_p10  ;;  %s175_s9 = sshll.u32 %s1116_s8, 4  ;;  %s176_s9 = int_to_ptr.vmem [resolvable:$true] %s175_s9 }
  0x16   : > { %s1117_s11 = smov [#allocation7]   ;;  %s960_s15 = scalar_lea.hbm %s1424_s1, 2048 }
  0x17   : > { %s1437_s7 = scalar_select %p1219_p13, 1, 0 }
  0x18   : > { %p861_p1 = pneg %p1219_p13  ;;  %s191_s12 = sshll.u32 %s1117_s11, 4  ;;  %s1231_s12 = int_to_ptr.vmem [resolvable:$true] %s191_s12 }
  0x19   : > { %p961_p0 = scmp.ne.s32.totalorder %s1424_s1, %s960_s15  ;;  %p967_p9 = scmp.lt.u32.totalorder %s960_s15, %s1424_s1 }
  0x1a   : > { %p1227_p2 = pnand %p861_p1, %p1429_p4 }
  0x1c   : > { %p962_p3 = pneg %p1227_p2 }
  0x1e   : > { %p963_p7 = pnand %p962_p3, %p961_p0 }
  0x20   : > { %p964_p8 = pneg %p963_p7 }
  0x22   : > { %p969_p10 = pnand %p967_p9, %p964_p8 }
  0x24   : > { %972 = shalt.err (!%p969_p10)
}
  0x25   : > { %s973_s26 = scalar_lea.vmem %s176_s9, 2048  ;;  %p981_p11 = scmp.lt.s32.totalorder %s176_s9, %s176_s9 }
  0x26   : > { %p974_p1 = scmp.ne.s32.totalorder %s176_s9, %s973_s26  ;;  %p982_p6 = scmp.lt.s32.totalorder %s973_s26, %s973_s26 }
  0x28   : > { %p976_p4 = pnand %p974_p1, %p962_p3  ;;  %p983_p13 = por %p982_p6, %p981_p11 }
  0x2a   : > { %p977_p12 = pneg %p976_p4 }
  0x2c   : > { %p984_p5 = pnand %p983_p13, %p977_p12 }
  0x2e   : > { %987 = shalt.err (!%p984_p5)
}
  0x2f   : > { %s1118_s8 = smov 64   ;;  %s1119_s11 = smov 4  }
  0x30   : > { %864 = dma.hbm_to_vmem [thread:$0]  (!%p1227_p2), %s1424_s1, 2048, %s176_s9, [#allocation6], %s1118_s8, %s1118_s8, %s1119_s11  }
  0x31   : > { %s988_s17 = scalar_lea.hbm %s1426_s3, 2048 }
  0x32   : > { %p989_p4 = scmp.ne.s32.totalorder %s1426_s3, %s988_s17  ;;  %p995_p11 = scmp.lt.u32.totalorder %s988_s17, %s1426_s3 }
  0x34   : > { %p991_p5 = pnand %p989_p4, %p962_p3 }
  0x36   : > { %p992_p6 = pneg %p991_p5 }
  0x38   : > { %p997_p12 = pnand %p995_p11, %p992_p6 }
  0x3a   : > { %1000 = shalt.err (!%p997_p12)
}
  0x3b   : > { %s1001_s9 = scalar_lea.vmem %s1231_s12, 2048  ;;  %p1009_p8 = scmp.lt.s32.totalorder %s1231_s12, %s1231_s12 }
  0x3c   : > { %p1002_p13 = scmp.ne.s32.totalorder %s1231_s12, %s1001_s9  ;;  %p1010_p9 = scmp.lt.s32.totalorder %s1001_s9, %s1001_s9 }
  0x3e   : > { %p1004_p0 = pnand %p1002_p13, %p962_p3  ;;  %p1011_p10 = por %p1010_p9, %p1009_p8 }
  0x40   : > { %p1005_p7 = pneg %p1004_p0 }
  0x42   : > { %p1012_p1 = pnand %p1011_p10, %p1005_p7 }
  0x44   : > { %1015 = shalt.err (!%p1012_p1)
}
  0x45   : > { %s1120_s27 = smov 128   ;;  %s1121_s8 = smov 8  }
  0x46   : > { %867 = dma.hbm_to_vmem [thread:$0]  (!%p1227_p2), %s1426_s3, 2048, %s1231_s12, [#allocation6], %s1120_s27, %s1120_s27, %s1121_s8  }
  0x47   : > { %p762_p4 = scmp.ge.s32.totalorder %s1114_s21, 2 }
  0x48   : > { %p1439_p3 = scmp.ne.s32.totalorder (!%p762_p4), %s1433_s28, 0 }
  0x49   : > { %204 = sbr.rel (%p762_p4) target bundleno = 115 (0x73), region = 32 }
  0x50   : > { %207 = sbr.rel (!%p1439_p3) target bundleno = 115 (0x73), region = 36  ;;  %s208_s14 = sand.u32 (%p1439_p3), 1, %s1110_s20  }
  0x51   : > { %s764_s15 = sshll.u32 (%p1439_p3), %s1114_s21, 1  ;;  %s763_s16 = sshll.u32 (%p1439_p3), %s208_s14, 5 }
  0x52   : > { %s214_s17 = ssub.s32 (%p1439_p3), 3, %s764_s15  ;;  %s1290_s23 = scalar_lea.sflag (%p1439_p3), [#allocation3], %s208_s14 }
  0x53   : > { %p215_p5 = scmp.lt.s32.totalorder (%p1439_p3), %s214_s17, 2  ;;  %s212_s25 = scalar_lea.vmem (%p1439_p3), [#allocation2], %s763_s16 }
  0x57   : > { %s1452_s17 = smov (!%p215_p5, %s214_s17), 2 }
  0x58   : > { %s1287_s10 = sshll.u32 %s1452_s17, 8 }
  0x59   : > { %s220_s12 = ssub.s32 512, %s1287_s10 }
  0x5a   : > { %221 = vsyncadd %s1290_s23, %s220_s12  ;;  %p767_p2 = scmp.ne.s32.totalorder %s1287_s10, 0  ;;  %s824_s28 = sshll.u32 %s1114_s21, 9 }
  0x5b   : > { %s1298_s27 = scalar_lea.hbm %s1423_s0, %s824_s28  ;;  %s227_s8 = sshll.u32 %s212_s25, 4  ;;  %s1300_s8 = int_to_ptr.vmem [resolvable:$true] %s227_s8 }
  0x5c   : > { %s1016_s11 = scalar_lea.hbm %s1298_s27, %s1287_s10  ;;  %s1020_s15 = scalar_lea.hbm %s1423_s0, 768 }
  0x5d   : > { %p1017_p6 = scmp.ne.s32.totalorder %s1298_s27, %s1016_s11  ;;  %p1021_p13 = scmp.lt.u32.totalorder %s1298_s27, %s1423_s0 }
  0x5e   : > { %p1022_p0 = scmp.lt.u32.totalorder %s1020_s15, %s1016_s11  ;;  %p1024_p8 = scmp.lt.u32.totalorder %s1016_s11, %s1298_s27 }
  0x5f   : > { %p1018_p11 = pnand %p1017_p6, %p767_p2 }
  0x60   : > { %p1023_p7 = por %p1022_p0, %p1021_p13 }
  0x61   : > { %p1019_p12 = pneg %p1018_p11 }
  0x62   : > { %p1025_p9 = por %p1024_p8, %p1023_p7 }
  0x64   : > { %p1026_p10 = pnand %p1025_p9, %p1019_p12 }
  0x66   : > { %1029 = shalt.err (!%p1026_p10)
}
  0x67   : > { %s1030_s12 = scalar_lea.vmem %s1300_s8, %s1287_s10  ;;  %s1122_s25 = smov [#allocation2]  }
  0x68   : > { %p1031_p1 = scmp.ne.s32.totalorder %s1300_s8, %s1030_s12  ;;  %s1034_s28 = sshll.u32 %s1122_s25, 4  ;;  %s1035_s28 = int_to_ptr.vmem [resolvable:$false] %s1034_s28 }
  0x69   : > { %s1036_s26 = scalar_lea.vmem %s1035_s28, 1024  ;;  %p1037_p6 = scmp.lt.s32.totalorder %s1300_s8, %s1035_s28 }
  0x6a   : > { %p1032_p3 = pnand %p1031_p1, %p767_p2  ;;  %p1038_p11 = scmp.lt.s32.totalorder %s1036_s26, %s1030_s12 }
  0x6c   : > { %p1033_p5 = pneg %p1032_p3  ;;  %p1039_p13 = por %p1038_p11, %p1037_p6 }
  0x6e   : > { %p1040_p0 = pnand %p1039_p13, %p1033_p5 }
  0x70   : > { %1043 = shalt.err (!%p1040_p0)
}
  0x71   : > { %s1123_s9 = smov 256   ;;  %s1124_s11 = smov 16  }
  0x72   : > { %233 = dma.hbm_to_vmem [thread:$0]  (%p767_p2), %s1298_s27, %s1287_s10, %s1300_s8, %s1290_s23, %s1123_s9, %s1123_s9, %s1124_s11  }
  0x73 PF: > { %p1440_p12 = scmp.ne.s32.totalorder %s1437_s7, 0 }
  0x74   : > { %s1330_s13 = sand.u32 (!%p1440_p12), 1, %s1106_s19   ;;  %p1441_p7 = scmp.ne.s32.totalorder (!%p1440_p12), %s1434_s29, 0 }
  0x75   : > { %239 = sbr.rel (%p1440_p12) target bundleno = 631 (0x277), region = 40  ;;  %s773_s14 = sshll.u32 (!%p1440_p12), %s1330_s13, 5 }
  0x76   : > { %s242_s15 = scalar_lea.sflag (!%p1440_p12), [#allocation3], %s1330_s13  ;;  %s1336_s16 = scalar_lea.vmem (!%p1440_p12), [#allocation2], %s773_s14 }
  0x7c   : > { %1089 = dma.done.wait (%p1441_p7), %s242_s15, 512  }
  0x7d   : > { %1091 = vsyncadd (%p1441_p7), %s242_s15, 4294966784  ;;  %p1442_p2 = scmp.eq.s32.totalorder %s1180_s22, 0 }
  0x7f   : > { %1093 = dma.done.wait (%p1442_p2), [#allocation6], 4096   ;;  %p1443_p8 = pmov %p1442_p2 }
  0x80   : > { %v920_v0 = vld [vmem:[#allocation5 + $0x40] sm:$0xff]   ;;  %v922_v2 = vld [vmem:[#allocation5 + $0x48] sm:$0xff]   ;;  %v924_v4 = vld [vmem:[#allocation5 + $0x50] sm:$0xff]   ;;  %vm433_vm0 = vcmask 998400   ;;  %vm437_vm1 = vcmask 1044480   ;;  %v1125_v38 = vmov 0   ;;  %v507_v53 = vlaneseq }
  0x81   : > { %1095 = vsyncadd (%p1443_p8), [#allocation6], 4294963200  ;;  %v921_v1 = vld [vmem:[#allocation5] sm:$0xff]   ;;  %828 = vmatprep.subr.bf16.mxu0 %v920_v0  ;;  %v923_v3 = vld [vmem:[#allocation5 + $0x8] sm:$0xff]   ;;  %629 = vmatprep.mubr.bf16.mxu1 %v1125_v38  ;;  %s279_s27 = scalar_lea.vmem [#allocation8], %s773_s14  ;;  %s645_s8 = scalar_lea.sflag [#allocation4], %s1330_s13 }
  0x82   : > { %829 = vmatpush3.bf16.msra.mxu0 %v921_v1  ;;  %v925_v5 = vld [vmem:[#allocation5 + $0x10] sm:$0xff]   ;;  %v926_v6 = vld [vmem:[#allocation5 + $0x58] sm:$0xff]   ;;  %v928_v8 = vld [vmem:[#allocation5 + $0x60] sm:$0xff]   ;;  %v508_v54 = vshrl.u32 %v507_v53, 7  ;;  %p1444_p9 = scmp.ne.s32.totalorder %s1435_s30, 0 }
  0x83   : > { %830 = vmatprep.subr.bf16.mxu0 %v922_v2  ;;  %v927_v7 = vld [vmem:[#allocation5 + $0x18] sm:$0xff]   ;;  %v929_v9 = vld [vmem:[#allocation5 + $0x20] sm:$0xff]   ;;  %v930_v10 = vld [vmem:[#allocation5 + $0x68] sm:$0xff]   ;;  %s812_s17 = sshll.u32 (%p1444_p9), %s1180_s22, 1 }
  0x84   : > { %v294_v11 = vld [vmem:[%s1336_s16 + $0x8] sm:$0xff]  ;;  %v296_v12 = vld [vmem:[%s1336_s16 + $0x18] sm:$0xff]  ;;  %v932_v18 = vld [vmem:[#allocation5 + $0x70] sm:$0xff]   ;;  %v509_v55 = vsub.s32 0, %v508_v54  ;;  %v513_v57 = vsub.s32 1, %v508_v54  ;;  %s653_s12 = ssub.s32 (%p1444_p9), 3, %s812_s17 }
  0x85   : > { %v298_v13 = vpack.c.bf16 %v296_v12, %v294_v11  ;;  %v936_v14 = vld [vmem:[#allocation7 + $0x4] ss:$8 sps:$4 sm:$0xff]   ;;  %v938_v15 = vld [vmem:[#allocation7] ss:$8 sps:$4 sm:$0xff]   ;;  %v939_v17 = vld [vmem:[#allocation7 + $0x14] ss:$8 sps:$4 sm:$0xff]  }
  0x86   : > { %831 = vmatpush3.bf16.msra.mxu0 %v923_v3  ;;  %v931_v16 = vld [vmem:[#allocation5 + $0x28] sm:$0xff]   ;;  %597 = vmatprep.subr.bf16.mxu1 %v936_v14  ;;  %v941_v19 = vld [vmem:[#allocation7 + $0x10] ss:$8 sps:$4 sm:$0xff]   ;;  %v945_v24 = vld [vmem:[#allocation7 + $0x34] ss:$8 sps:$4 sm:$0xff]   ;;  %p654_p10 = scmp.lt.s32.totalorder (%p1444_p9), %s653_s12, 2 }
  0x87   : > { %832 = vmatprep.subr.bf16.mxu0 %v924_v4  ;;  %794 = vmatprep.mubr.msk.bf16.mxu0 %vm433_vm0, %v298_v13  ;;  %v933_v20 = vld [vmem:[#allocation5 + $0x30] sm:$0xff]   ;;  %v942_v21 = vld [vmem:[#allocation7 + $0x24] ss:$8 sps:$4 sm:$0xff]   ;;  %v934_v22 = vld [vmem:[#allocation5 + $0x78] sm:$0x1f]  }
  0x88   : > { %598 = vmatpush1.bf16.msra.mxu1 %v938_v15  ;;  %v944_v23 = vld [vmem:[#allocation7 + $0x20] ss:$8 sps:$4 sm:$0xff]   ;;  %v935_v25 = vld [vmem:[#allocation5 + $0x38] sm:$0xff]   ;;  %v295_v27 = vld [vmem:[%s1336_s16 + $0x10] sm:$0xff] }
  0x89   : > { %599 = vmatprep.subr.bf16.mxu1 %v939_v17  ;;  %v293_v26 = vld [vmem:[%s1336_s16] sm:$0xff]  ;;  %v947_v28 = vld [vmem:[#allocation7 + $0x30] ss:$8 sps:$4 sm:$0xff]   ;;  %v951_v32 = vld [vmem:[#allocation7 + $0x54] ss:$8 sps:$4 sm:$0xff]  }
  0x8a   : > { %833 = vmatpush3.bf16.msra.mxu0 %v925_v5  ;;  %v297_v29 = vpack.c.bf16 %v295_v27, %v293_v26  ;;  %v948_v30 = vld [vmem:[#allocation7 + $0x44] ss:$8 sps:$4 sm:$0xff]   ;;  %v950_v31 = vld [vmem:[#allocation7 + $0x40] ss:$8 sps:$4 sm:$0xff]   ;;  %v953_v33 = vld [vmem:[#allocation7 + $0x50] ss:$8 sps:$4 sm:$0xff]  }
  0x8b   : > { %834 = vmatprep.subr.bf16.mxu0 %v926_v6  ;;  %v954_v34 = vld [vmem:[#allocation7 + $0x64] ss:$8 sps:$4 sm:$0xff]   ;;  %v956_v35 = vld [vmem:[#allocation7 + $0x60] ss:$8 sps:$4 sm:$0xff]   ;;  %v957_v36 = vld [vmem:[#allocation7 + $0x74] ss:$8 sps:$4 sm:$0xff]  }
  0x8c   : > { %600 = vmatpush1.bf16.msra.mxu1 %v941_v19  ;;  %v959_v37 = vld [vmem:[#allocation7 + $0x70] ss:$8 sps:$4 sm:$0xff]   ;;  %v777_v40 = vld [vmem:[%s1425_s2] ss:$0 sm:$0xff] }
  0x8d   : > { %601 = vmatprep.subr.bf16.mxu1 %v942_v21  ;;  %v505_v56 = vld [vmem:[%s1427_s4] sm:$0x3] }
  0x8e   : > { %835 = vmatpush3.bf16.msra.mxu0 %v927_v7  ;;  %v510_v58 = vrot.slane %v505_v56, %v509_v55  ;;  %v514_v59 = vrot.slane %v505_v56, %v513_v57 }
  0x8f   : > { %836 = vmatprep.subr.bf16.mxu0 %v928_v8 }
  0x90   : > { %602 = vmatpush1.bf16.msra.mxu1 %v944_v23 }
  0x91   : > { %603 = vmatprep.subr.bf16.mxu1 %v945_v24 }
  0x92   : > { %837 = vmatpush3.bf16.msra.mxu0 %v929_v9 }
  0x93   : > { %838 = vmatprep.subr.bf16.mxu0 %v930_v10 }
  0x94   : > { %604 = vmatpush1.bf16.msra.mxu1 %v947_v28 }
  0x95   : > { %605 = vmatprep.subr.bf16.mxu1 %v948_v30 }
  0x96   : > { %839 = vmatpush3.bf16.msra.mxu0 %v931_v16 }
  0x97   : > { %840 = vmatprep.subr.bf16.mxu0 %v932_v18 }
  0x98   : > { %606 = vmatpush1.bf16.msra.mxu1 %v950_v31 }
  0x99   : > { %607 = vmatprep.subr.bf16.mxu1 %v951_v32 }
  0x9a   : > { %841 = vmatpush3.bf16.msra.mxu0 %v933_v20 }
  0x9b   : > { %850 = vmatprep.subr.msk.bf16.mxu0 %vm437_vm1, %v934_v22 }
  0x9c   : > { %608 = vmatpush1.bf16.msra.mxu1 %v953_v33 }
  0x9d   : > { %609 = vmatprep.subr.bf16.mxu1 %v954_v34 }
  0x9e   : > { %843 = vmatpush3.bf16.msra.mxu0 %v935_v25 }
  0xa0   : > { %610 = vmatpush1.bf16.msra.mxu1 %v956_v35 }
  0xa1   : > { %474 = vmatmul.mubr.bf16.vlgmr.msra.gmra.mrb[0].mxu0 %v297_v29  ;;  %611 = vmatprep.subr.bf16.mxu1 %v957_v36 }
  0xa4   : > { %612 = vmatpush1.bf16.msra.mxu1 %v959_v37 }
 0x174   : > { %v844_v39 = vpop.f32.mrb[0].mxu0 }
 0x175   : > { %v845_v41 = vpop.f32.mrb[1].mxu0 }
 0x176   : > { %v846_v42 = vadd.f32 %v845_v41, %v844_v39  ;;  %v847_v43 = vpop.f32.mrb[2].mxu0 }
 0x177   : > { %v848_v44 = vpop.f32.mrb[3].mxu0 }
 0x178   : > { %v476_v45 = vadd.f32 %v846_v42, %v777_v40  ;;  %v849_v46 = vadd.f32 %v848_v44, %v847_v43 }
 0x17a   : > { %v484_v47 = vmul.f32 0.2, %v476_v45  ;;  %v479_v48 = vadd.f32 %v849_v46, %v777_v40  ;;  %vm482_vm2 = vcmp.gt.f32.partialorder %v476_v45, 0.0 }
 0x17c   : > { %vm483_vm3 = vcmp.gt.f32.partialorder %v479_v48, 0.0  ;;  %v485_v49 = vmul.f32 0.2, %v479_v48  ;;  %v486_v50 = vsel %vm482_vm2, %v476_v45, %v484_v47 }
 0x17e   : > { %v487_v51 = vsel %vm483_vm3, %v479_v48, %v485_v49 }
 0x17f   : > { %v488_v52 = vpack.c.bf16 %v487_v51, %v486_v50 }
 0x181   : > { %630 = vmatmul.mubr.bf16.vlgmr.msra.gmra.mrb[0].mxu1 %v488_v52 }
 0x254   : > { %v631_v60 = vpop.f32.mrb[0].mxu1  ;;  %651 = sbr.rel (!%p1444_p9) target bundleno = 631 (0x277), region = 56 }
 0x255   : > { %v632_v61 = vadd.f32 %v631_v60, %v510_v58  ;;  %v633_v62 = vpop.f32.mrb[1].mxu1 }
 0x256   : > { %v634_v63 = vadd.f32 %v633_v62, %v514_v59  ;;  %v635_v0 = vpop.f32.mrb[2].mxu1 }
 0x257   : > { %640 = vst [vmem:[%s279_s27] sm:$0xff] %v632_v61  ;;  %v636_v1 = vadd.f32 %v635_v0, %v510_v58  ;;  %v637_v2 = vpop.f32.mrb[3].mxu1 }
 0x258   : > { %641 = vst.msk [vmem:[%s279_s27 + $0x8] sm:$0xff] %vm433_vm0, %v634_v63  ;;  %v638_v3 = vadd.f32 %v637_v2, %v514_v59 }
 0x259   : > { %642 = vst [vmem:[%s279_s27 + $0x10] sm:$0xff] %v636_v1 }
 0x25a   : > { %643 = vst.msk [vmem:[%s279_s27 + $0x18] sm:$0xff] %vm433_vm0, %v638_v3 }
 0x25b   : > { %s1454_s12 = smov (!%p654_p10, %s653_s12), 2 }
 0x25c   : > { %s1365_s25 = sshll.u32 %s1454_s12, 8 }
 0x25d   : > { %s659_s28 = ssub.s32 512, %s1365_s25 }
 0x25e   : > { %660 = vsyncadd %s645_s8, %s659_s28  ;;  %p815_p1 = scmp.ne.s32.totalorder %s1365_s25, 0  ;;  %s827_s26 = sshll.u32 %s1180_s22, 9 }
 0x25f   : > { %s1375_s11 = scalar_lea.hbm %s1428_s5, %s827_s26  ;;  %s666_s14 = sshll.u32 %s279_s27, 4  ;;  %s1377_s14 = int_to_ptr.vmem [resolvable:$true] %s666_s14 }
 0x260   : > { %s1044_s15 = scalar_lea.vmem %s1377_s14, %s1365_s25  ;;  %s1126_s16 = smov [#allocation8]  }
 0x261   : > { %p1045_p3 = scmp.ne.s32.totalorder %s1377_s14, %s1044_s15  ;;  %s1048_s29 = sshll.u32 %s1126_s16, 4  ;;  %s1049_s29 = int_to_ptr.vmem [resolvable:$false] %s1048_s29 }
 0x262   : > { %s1050_s22 = scalar_lea.vmem %s1049_s29, 1024  ;;  %p1051_p11 = scmp.lt.s32.totalorder %s1377_s14, %s1049_s29 }
 0x263   : > { %p1046_p5 = pnand %p1045_p3, %p815_p1  ;;  %p1052_p13 = scmp.lt.s32.totalorder %s1050_s22, %s1044_s15 }
 0x265   : > { %p1047_p6 = pneg %p1046_p5  ;;  %p1053_p0 = por %p1052_p13, %p1051_p11 }
 0x267   : > { %p1054_p12 = pnand %p1053_p0, %p1047_p6 }
 0x269   : > { %1057 = shalt.err (!%p1054_p12)
}
 0x26a   : > { %s1058_s7 = scalar_lea.hbm %s1375_s11, %s1365_s25  ;;  %s1062_s27 = scalar_lea.hbm %s1428_s5, 768 }
 0x26b   : > { %p1059_p7 = scmp.ne.s32.totalorder %s1375_s11, %s1058_s7  ;;  %p1063_p9 = scmp.lt.u32.totalorder %s1375_s11, %s1428_s5 }
 0x26c   : > { %p1064_p10 = scmp.lt.u32.totalorder %s1062_s27, %s1058_s7  ;;  %p1066_p5 = scmp.lt.u32.totalorder %s1058_s7, %s1375_s11 }
 0x26d   : > { %p1060_p2 = pnand %p1059_p7, %p815_p1 }
 0x26e   : > { %p1065_p3 = por %p1064_p10, %p1063_p9 }
 0x26f   : > { %p1061_p8 = pneg %p1060_p2 }
 0x270   : > { %p1067_p6 = por %p1066_p5, %p1065_p3 }
 0x272   : > { %p1068_p11 = pnand %p1067_p6, %p1061_p8 }
 0x274   : > { %1071 = shalt.err (!%p1068_p11)
}
 0x275   : > { %s1127_s28 = smov 256   ;;  %s1128_s26 = smov 16  }
 0x276   : > { %672 = dma.vmem_to_hbm [thread:$0]  (%p815_p1), %s1377_s14, %s1365_s25, %s1375_s11, %s645_s8, %s1127_s28, %s1127_s28, %s1128_s26  }
 0x277 PF: > { %s681_s30 = sand.u32 1, %s1102_s18   ;;  %p1445_p13 = scmp.ne.s32.totalorder %s1436_s6, 0 }
 0x278   : > { %s682_s9 = scalar_lea.sflag [#allocation4], %s681_s30 }
 0x279   : > { %p869_p0 = pnand %p762_p4, %p1445_p13 }
 0x27b   : > { %1097 = dma.done.wait (!%p869_p0), %s682_s9, 512  }
 0x27c   : > { %1099 = vsyncadd (!%p869_p0), %s682_s9, 4294966784  ;;  %s1446_s15 = sld [smem:[#allocation12_spill]]  ;;  %p19_p12 = scmp.ge.s32.totalorder %s1184_s24, 4  }
 0x27d   : > { %s1447_s18 = smov %s1106_s19  ;;  %s1448_s19 = smov %s1110_s20 }
 0x27e   : > { %s1450_s21 = smov %s1184_s24  ;;  %21 = sbr.rel (!%p19_p12) target bundleno = 6 (0x6), region = 93 }
 0x282   : > { %s1449_s20 = smov %s1446_s15 }
 0x285   :  { %687 = vsyncpa [#allocation3], 1 }
 0x286   :  { %689 = vsyncpa [#allocation3 + $0x1], 1 }
 0x287   :  { %690 = vsyncpa [#allocation6], 1 }
 0x288   :  { %691 = vsyncpa [#allocation4], 1 }
 0x289   :  { %693 = vsyncpa [#allocation4 + $0x1], 1 }

</bundles_post_ra>
